<compile_context>
chip_gen: v7x
topology: tpu7x:2x2x1
jax: 0.10.0
libtpu: 0.0.40
codegen_flags: <defaults>
</compile_context>

<pallas_src>
import functools
import math

import jax
import jax.numpy as jnp
from jax.experimental import pallas as pl
from jax.experimental.pallas import tpu as pltpu


# --------------------------------------------------------------------------- kernels


def _shift_aligned_kernel(x_ref, o_ref, *, dwf, bt):
    """Path 1: the H roll was already applied by the input index_map.

    x_ref/o_ref: (bt, th, W*C). Only the (optional) W roll -- a lane roll of the
    flattened last dim by dwf = dw*C -- remains; it is done per batch slice so the
    rolled array stays 2-D (Mosaic rotates operate on the last two dims).
    """
    if dwf == 0:
        o_ref[...] = x_ref[...]
    else:
        for i in range(bt):                          # static unroll
            o_ref[i] = pltpu.roll(x_ref[i], dwf, axis=1)


def _shift_full_kernel(x_ref, o_ref, *, dh, dwf):
    """Path 2a: whole (H, W*C) image per grid step.

    Both rolls happen in registers (XLU sublane + lane rotates), then a single
    full-width unmasked store (avoids masked vst at non-8-aligned row boundaries).
    """
    x = x_ref[...]
    if dh:
        x = pltpu.roll(x, dh, axis=0)                # sublane roll: out[i] = in[(i-dh)%H]
    if dwf:
        x = pltpu.roll(x, dwf, axis=1)               # lane roll: W roll of flattened W*C
    o_ref[...] = x


def _shift_tiled_wrap_kernel(lo_ref, hi_ref, o_ref, *, dhm, dwf, th, wc):
    """Path 2b: H-tiled non-aligned shift.

    Output rows of this tile come from two aligned source tiles: 'lo' holds the tile
    containing the first dhm output rows' sources, 'hi' the next tile. Rolling both by
    dhm sublanes puts every needed row at its output position; a row-index select picks
    which tile supplies it. One full unmasked store.
    """
    lo = pltpu.roll(lo_ref[...], dhm, axis=0)
    hi = pltpu.roll(hi_ref[...], dhm, axis=0)
    row = jax.lax.broadcasted_iota(jnp.int32, (th, wc), 0)
    out = jnp.where(row < dhm, lo, hi)
    if dwf:
        out = pltpu.roll(out, dwf, axis=1)
    o_ref[...] = out


# --------------------------------------------------------------------------- wrapper


def _divisors(n):
    return [d for d in range(1, n + 1) if n % d == 0]


def _vmem_capacity_bytes():
    try:
        return int(pltpu.get_tpu_info().vmem_capacity_bytes)
    except Exception:
        return 64 * 1024 * 1024          # conservative default = v7x (smallest VMEM)


def cyclic_shift(x, displacement, *, max_block_bytes=None):
    """Pallas equivalent of CyclicShift(displacement)(x) for x of shape (B, H, W, C)."""
    B, H, W, C = x.shape
    dh = int(displacement[0]) % H
    dw = int(displacement[1]) % W
    if dh == 0 and dw == 0:
        return x

    WC = W * C
    dwf = dw * C                          # W roll == lane roll of the flattened (W*C) dim
    itemsize = jnp.dtype(x.dtype).itemsize
    xf = x.reshape(B, H, WC)              # lane-dense last dim (free row-major reshape)
    row_bytes = WC * itemsize
    total_bytes = B * H * row_bytes
    # TODO(synk): if W*C < 128 the output lane dim is still partially masked; such
    # small-C configs would need an extra fold of rows into the lane dim.

    # --- block budget (generation aware) ------------------------------------------
    vmem_cap = _vmem_capacity_bytes()
    usable_vmem = (vmem_cap * 3) // 4     # headroom for Mosaic internal scratch
    budget = vmem_cap // 8                # ~8 MiB on v7x, ~16 MiB on v5e/v6e
    # Keep >=4 grid steps on large tensors (feeds both v7x TCs) but never shrink blocks
    # below ~2 MiB -- already at HBM roofline for a pure copy.
    budget = min(budget, max(total_bytes // 4, 2 * 1024 * 1024))
    if max_block_bytes is not None:
        budget = min(budget, int(max_block_bytes))

    # --- path selection --------------------------------------------------------------
    g = H if dh == 0 else math.gcd(dh, H)
    aligned = [d for d in _divisors(g) if d % 8 == 0 or d == H]

    if aligned:
        # Path 1: H roll is pure DMA addressing via the input index_map.
        fitting = [d for d in aligned if d * row_bytes <= budget]
        th = max(fitting) if fitting else min(aligned)
        nH = H // th
        dhb = dh // th                                    # whole-block shift along H
        bts = [d for d in _divisors(B)
               if d * th * row_bytes <= budget and (dwf == 0 or d <= 64)]
        Bt = max(bts) if bts else 1
        block_bytes = Bt * th * row_bytes
        kernel = functools.partial(_shift_aligned_kernel, dwf=dwf, bt=Bt)
        grid = (B // Bt, nH)
        in_specs = [pl.BlockSpec((Bt, th, WC),
                                 lambda b, h: (b, (h + nH - dhb) % nH, 0))]
        out_specs = pl.BlockSpec((Bt, th, WC), lambda b, h: (b, h, 0))
        dims = ("parallel", "parallel")
        n_blocks_live = 4                                 # (in + out) x double buffer
        inputs = (xf,)
    else:
        img_bytes = H * row_bytes
        tile_ths = [d for d in _divisors(H) if d % 8 == 0 and d < H]
        if img_bytes <= budget or not tile_ths:
            # Path 2a: whole image per step; wrap handled by an XLU sublane roll.
            # TODO(synk): an image larger than VMEM whose H has no multiple-of-8 divisor
            # would need a manual-DMA gather path; irrelevant for the shapes used here.
            kernel = functools.partial(_shift_full_kernel, dh=dh, dwf=dwf)
            grid = (B,)
            in_specs = [pl.BlockSpec((None, H, WC), lambda b: (b, 0, 0))]
            out_specs = pl.BlockSpec((None, H, WC), lambda b: (b, 0, 0))
            dims = ("parallel",)
            block_bytes = img_bytes
            n_blocks_live = 4
            inputs = (xf,)
        else:
            # Path 2b: H-tiled; each output tile reads its two aligned source tiles.
            fitting = [d for d in tile_ths if d * row_bytes <= budget]
            th = max(fitting) if fitting else min(tile_ths)
            nH = H // th
            dhm = dh % th                                 # != 0 here (else path 1 applied)
            qlo = (dh // th + 1) % nH
            qhi = (dh // th) % nH
            kernel = functools.partial(_shift_tiled_wrap_kernel,
                                       dhm=dhm, dwf=dwf, th=th, wc=WC)
            grid = (B, nH)
            in_specs = [
                pl.BlockSpec((None, th, WC), lambda b, h: (b, (h + nH - qlo) % nH, 0)),
                pl.BlockSpec((None, th, WC), lambda b, h: (b, (h + nH - qhi) % nH, 0)),
            ]
            out_specs = pl.BlockSpec((None, th, WC), lambda b, h: (b, h, 0))
            dims = ("parallel", "parallel")
            block_bytes = th * row_bytes
            n_blocks_live = 6                             # 2 inputs + 1 output, double-buffered
            inputs = (xf, xf)

    # Default 2-deep pipelining on purpose (HBM-bound copy; deeper buffering only
    # multiplies the VMEM footprint). Keep headroom below physical VMEM.
    vmem_limit = min(usable_vmem,
                     max(32 * 1024 * 1024, n_blocks_live * block_bytes + (2 << 20)))

    out = pl.pallas_call(
        kernel,
        out_shape=jax.ShapeDtypeStruct((B, H, WC), x.dtype),
        grid_spec=pltpu.PrefetchScalarGridSpec(
            num_scalar_prefetch=0,
            grid=grid,
            in_specs=in_specs,
            out_specs=out_specs,
        ),
        compiler_params=pltpu.CompilerParams(
            dimension_semantics=dims,
            vmem_limit_bytes=vmem_limit,
        ),
    )(*inputs)
    return out.reshape(B, H, W, C)


if __name__ == "__main__":
    key = jax.random.PRNGKey(0)
    B, H, W, C = 2, 16, 16, 32
    x = jax.random.normal(key, (B, H, W, C), dtype=jnp.float32)

    cases = [
        ((3, -5), None),   # non-aligned H shift      -> path 2a (sublane + lane roll)
        ((8, -5), None),   # 8-aligned H shift        -> path 1 (H roll via index_map), Bt=2
        ((0, 4), None),    # pure W roll              -> path 1, whole-H blocks, batch-folded
        ((-3, 0), None),   # pure H roll, non-aligned -> path 2a (sublane roll only)
        ((3, -5), 4096),   # tiny budget              -> path 2b (H-tiled two-source wrap)
        ((5, 7), 4096),    # path 2b, different wrap offset + lane roll
        ((8, 4), 4096),    # tiny budget, aligned     -> path 1 with th=8, Bt=1
    ]
    for disp, cap in cases:
        out = jax.block_until_ready(cyclic_shift(x, disp, max_block_bytes=cap))
        ref = jnp.roll(x, shift=disp, axis=(1, 2))     # same semantics as torch.roll
        assert out.shape == ref.shape and out.dtype == ref.dtype
        assert jnp.array_equal(out, ref), f"mismatch vs jnp.roll for {disp} (cap={cap})"

    print("KERNEL_OK")
</pallas_src>

<mosaic_0001>
module attributes {stable_mosaic.version = 11 : i64} {
  func.func @_shift_full_kernel(%arg0: i32, %arg1: memref<1x16x512xf32, #tpu.memory_space<vmem>>, %arg2: memref<1x16x512xf32, #tpu.memory_space<vmem>>) attributes {dimension_semantics = [#tpu.dimension_semantics<parallel>], iteration_bounds = array<i64: 2>, scalar_prefetch = 0 : i64, scratch_operands = 0 : i64, tpu.core_type = #tpu.core_type<tc>, window_params = [{transform_indices = @transform_0, window_bounds = array<i64: 1, 16, 512>}, {transform_indices = @transform_1, window_bounds = array<i64: 1, 16, 512>}]} {
    %c0 = arith.constant 0 : index
    %c0_0 = arith.constant 0 : index
    %c0_1 = arith.constant 0 : index
    %0 = vector.load %arg1[%c0, %c0_0, %c0_1] : memref<1x16x512xf32, #tpu.memory_space<vmem>>, vector<1x16x512xf32>
    %1 = vector.shape_cast %0 : vector<1x16x512xf32> to vector<16x512xf32>
    %c3_i32 = arith.constant 3 : i32
    %2 = tpu.dynamic_rotate %1 by %c3_i32 dim 0 : vector<16x512xf32>, i32 -> vector<16x512xf32>
    %c352_i32 = arith.constant 352 : i32
    %3 = tpu.dynamic_rotate %2 by %c352_i32 dim 1 : vector<16x512xf32>, i32 -> vector<16x512xf32>
    %c0_2 = arith.constant 0 : index
    %c0_3 = arith.constant 0 : index
    %c0_4 = arith.constant 0 : index
    %4 = vector.load %arg2[%c0_2, %c0_3, %c0_4] : memref<1x16x512xf32, #tpu.memory_space<vmem>>, vector<1x16x512xf32>
    %5 = vector.shape_cast %4 : vector<1x16x512xf32> to vector<16x512xf32>
    %6 = vector.shape_cast %3 : vector<16x512xf32> to vector<1x16x512xf32>
    tpu.vector_store %arg2[%c0_2, %c0_3, %c0_4], %6 {strides = array<i32>} : memref<1x16x512xf32, #tpu.memory_space<vmem>>, vector<1x16x512xf32>,
    return
  }
  func.func @transform_0(%arg0: i32) -> (i32, i32, i32) {
    %c0_i32 = arith.constant 0 : i32
    %c0_i32_0 = arith.constant 0 : i32
    %c0_i32_1 = arith.constant 0 : i32
    return %arg0, %c0_i32, %c0_i32_0 : i32, i32, i32
  }
  func.func @transform_1(%arg0: i32) -> (i32, i32, i32) {
    %c0_i32 = arith.constant 0 : i32
    %c0_i32_0 = arith.constant 0 : i32
    %c0_i32_1 = arith.constant 0 : i32
    return %arg0, %c0_i32, %c0_i32_0 : i32, i32, i32
  }
}

</mosaic_0001>

<bundles_post_ra>
// kernel: tpu_custom_call.1
= control target key start
LH: loop header
LB: loop body
LE: loop exit
PB: predicated region body
PF: predicated region fallthrough
CT: control target
= control target key end

     0   :  { %6 = vsyncpa [#allocation3], 0  ;;  %s648_s0 = inlined_call_operand.hbm [shape: f32[2,16,512], index: 0, kind: input, shape index: {}]   ;;  %s649_s1 = inlined_call_operand.hbm [shape: f32[2,16,512], index: 1, kind: output, shape index: {}]  }
   0x1   :  { %8 = vsyncpa [#allocation3 + $0x1], 0 }
   0x2   :  { %9 = vsyncpa [#allocation4], 0 }
   0x3   :  { %11 = vsyncpa [#allocation4 + $0x1], 0  ;;  %s466_s6 = smov 0   ;;  %s468_s7 = smov 0  }
   0x4   :  { %s470_s8 = smov 0   ;;  %s472_s9 = smov 0  }
   0x5 LB: > { %s487_s10 = sadd.s32 4294967295, %s447_s9   ;;  %s284_s11 = sadd.s32 4294967294, %s447_s9   ;;  %s447_s9 = sphi %s472_s9, %s662_s9   ;;  %s443_s8 = sphi %s470_s8, %s661_s8   ;;  %s439_s7 = sphi %s468_s7, %s660_s7   ;;  %s435_s6 = sphi %s466_s6, %s659_s6  }
   0x6   : > { %s491_s12 = sadd.s32 1, %s447_s9   ;;  %s24_s13 = sadd.s32 1, %s443_s8 }
   0x7   : > { %s21_s14 = ssub.s32 %s447_s9, %s491_s12  ;;  %p31_p0 = scmp.ne.s32.totalorder %s443_s8, %s439_s7 }
   0x8   : > { %p22_p1 = scmp.eq.s32.totalorder %s21_s14, 0  ;;  %p32_p2 = scmp.eq.s32.totalorder %s447_s9, 0 }
   0x9   : > { %p37_p3 = scmp.ne.s32.totalorder %s439_s7, %s435_s6  ;;  %p38_p4 = scmp.eq.s32.totalorder %s487_s10, 0 }
   0xa   : > { %s503_s15 = scalar_select %p22_p1, %s443_s8, %s24_s13  }
   0xb   : > { %p505_p5 = por %p32_p2, %p31_p0  ;;  %p509_p6 = por %p38_p4, %p37_p3 }
   0xc   : > { %p61_p7 = scmp.eq.s32.totalorder %s487_s10, 1  ;;  %p67_p8 = scmp.eq.s32.totalorder %s284_s11, 1 }
   0xd   : > { %p312_p10 = scmp.lt.s32.totalorder %s447_s9, 2  ;;  %s87_s20 = sand.u32 1, %s443_s8  }
   0xe   : > { %p516_p11 = por %p61_p7, %p31_p0  ;;  %p520_p12 = por %p67_p8, %p37_p3 }
   0xf   : > { %s298_s21 = sshll.u32 %s447_s9, 10  ;;  %s287_s22 = sshll.u32 %s87_s20, 6 }
  0x10   : > { %s653_s18 = scalar_select %p516_p11, 1, 0 }
  0x11   : > { %s654_s19 = scalar_select %p520_p12, 1, 0 }
  0x12   : > { %s529_s25 = scalar_lea.hbm %s648_s0, %s298_s21  ;;  %s91_s26 = scalar_lea.vmem [#allocation2], %s287_s22 }
  0x13   : > { %s98_s27 = sshll.u32 %s91_s26, 4  ;;  %p533_p13 = pnand %p312_p10, %p505_p5  ;;  %s537_s27 = int_to_ptr.vmem [resolvable:$true] %s98_s27 }
  0x14   : > { %s539_s29 = scalar_lea.sflag [#allocation3], %s87_s20  ;;  %s351_s30 = scalar_lea.hbm %s529_s25, 1024 }
  0x15   : > { %p352_p0 = scmp.ne.s32.totalorder %s529_s25, %s351_s30  ;;  %p353_p1 = pneg %p533_p13 }
  0x16   : > { %s356_s4 = scalar_lea.hbm %s648_s0, 2048  ;;  %p357_p4 = scmp.lt.u32.totalorder %s529_s25, %s648_s0 }
  0x17   : > { %p354_p2 = pnand %p353_p1, %p352_p0  ;;  %p358_p5 = scmp.lt.u32.totalorder %s356_s4, %s351_s30 }
  0x18   : > { %p360_p8 = scmp.lt.u32.totalorder %s351_s30, %s529_s25 }
  0x19   : > { %p355_p3 = pneg %p354_p2  ;;  %p359_p7 = por %p358_p5, %p357_p4 }
  0x1b   : > { %p361_p10 = por %p360_p8, %p359_p7 }
  0x1d   : > { %p362_p9 = pnand %p361_p10, %p355_p3 }
  0x1f   : > { %365 = shalt.err (!%p362_p9)
}
  0x20   : > { %s366_s13 = scalar_lea.vmem %s537_s27, 1024  ;;  %s449_s14 = smov [#allocation2]  }
  0x21   : > { %p367_p0 = scmp.ne.s32.totalorder %s537_s27, %s366_s13  ;;  %s371_s16 = sshll.u32 %s449_s14, 4  ;;  %s372_s16 = int_to_ptr.vmem [resolvable:$false] %s371_s16 }
  0x22   : > { %s373_s20 = scalar_lea.vmem %s372_s16, 2048  ;;  %p374_p11 = scmp.lt.s32.totalorder %s537_s27, %s372_s16 }
  0x23   : > { %p369_p2 = pnand %p367_p0, %p353_p1  ;;  %p375_p4 = scmp.lt.s32.totalorder %s373_s20, %s366_s13 }
  0x25   : > { %p370_p12 = pneg %p369_p2  ;;  %p376_p5 = por %p375_p4, %p374_p11 }
  0x27   : > { %p377_p7 = pnand %p376_p5, %p370_p12 }
  0x29   : > { %380 = shalt.err (!%p377_p7)
}
  0x2a   : > { %s450_s21 = smov 512   ;;  %s451_s22 = smov 32  }
  0x2b   : > { %307 = dma.hbm_to_vmem [thread:$0]  (!%p533_p13), %s529_s25, 1024, %s537_s27, %s539_s29, %s450_s21, %s450_s21, %s451_s22  }
  0x2c   : > { %p290_p9 = scmp.ge.s32.totalorder %s447_s9, 1  ;;  %p106_p1 = scmp.lt.s32.totalorder %s447_s9, 3 }
  0x2e   : > { %p107_p3 = pnand %p290_p9, %p106_p1 }
  0x2f   : > { %s570_s23 = sand.u32 (!%p107_p3), 1, %s439_s7  }
  0x30   : > { %110 = sbr.rel (%p107_p3) target bundleno = 206 (0xce), region = 24  ;;  %s291_s24 = sshll.u32 (!%p107_p3), %s570_s23, 6 }
  0x31   : > { %s113_s26 = scalar_lea.sflag (!%p107_p3), [#allocation3], %s570_s23  ;;  %s116_s30 = scalar_lea.vmem (!%p107_p3), [#allocation2], %s291_s24 }
  0x37   : > { %426 = dma.done.wait (%p509_p6), %s113_s26, 1024  }
  0x38   : > { %428 = vsyncadd (%p509_p6), %s113_s26, 4294966272  ;;  %v151_v0 = vlaneseq  ;;  %v136_v2 = vld [vmem:[%s116_s30 + $0x8] sm:$0xff]  ;;  %v135_v4 = vld [vmem:[%s116_s30] sm:$0xff]  ;;  %s452_s25 = smov 96   ;;  %s134_s17 = scalar_lea.vmem [#allocation5], %s291_s24 }
  0x39   : > { %v140_v3 = vld [vmem:[%s116_s30 + $0x28] sm:$0xff]  ;;  %v144_v5 = vrot.slane %v136_v2, 5  ;;  %v139_v7 = vld [vmem:[%s116_s30 + $0x20] sm:$0xff]  ;;  %v143_v8 = vrot.slane %v135_v4, 5  ;;  %v137_v10 = vld [vmem:[%s116_s30 + $0x10] sm:$0xff]  ;;  %s211_s27 = sshll.u32 %s134_s17, 4  ;;  %s595_s27 = int_to_ptr.vmem [resolvable:$true] %s211_s27 }
  0x3a   : > { %v152_v1 = vshrl.u32 %v151_v0, 7  ;;  %v148_v6 = vrot.slane %v140_v3, 5  ;;  %v147_v9 = vrot.slane %v139_v7, 5  ;;  %v141_v11 = vld [vmem:[%s116_s30 + $0x30] sm:$0xff]  ;;  %v145_v15 = vrot.slane %v137_v10, 5  ;;  %v138_v18 = vld [vmem:[%s116_s30 + $0x18] sm:$0xff] }
  0x3b   : > { %v149_v16 = vrot.slane %v141_v11, 5  ;;  %v142_v19 = vld [vmem:[%s116_s30 + $0x38] sm:$0xff]  ;;  %v146_v21 = vrot.slane %v138_v18, 5  ;;  %v179_v26 = vand.u32 127, %v151_v0  ;;  %s299_s28 = sshll.u32 %s487_s10, 10  ;;  %s198_s10 = scalar_lea.sflag [#allocation4], %s570_s23 }
  0x3c   : > { %vm153_vm0 = vcmp.lt.s32.totalorder %v152_v1, 3  ;;  %v150_v22 = vrot.slane %v142_v19, 5  ;;  %s600_s3 = scalar_lea.hbm %s649_s1, %s299_s28  ;;  %s381_s4 = scalar_lea.vmem %s595_s27, 1024 }
  0x3d   : > { %v159_v12 = vsel %vm153_vm0, %v148_v6, %v144_v5  ;;  %v158_v13 = vsel %vm153_vm0, %v147_v9, %v143_v8  ;;  %v155_v14 = vsel %vm153_vm0, %v144_v5, %v148_v6  ;;  %v154_v17 = vsel %vm153_vm0, %v143_v8, %v147_v9  ;;  %p382_p6 = scmp.ne.s32.totalorder %s595_s27, %s381_s4  ;;  %p656_p11 = scmp.ne.s32.totalorder %s653_s18, 0 }
  0x3e   : > { %166 = vrot.lane.b32.xlu1 %v159_v12, %s452_s25  ;;  %162 = vrot.lane.b32.xlu0 %v158_v13, %s452_s25  ;;  %v156_v20 = vsel %vm153_vm0, %v145_v15, %v149_v16  ;;  %v160_v23 = vsel %vm153_vm0, %v149_v16, %v145_v15  ;;  %v157_v24 = vsel %vm153_vm0, %v146_v21, %v150_v22  ;;  %vm180_vm1 = vcmp.lt.s32.totalorder %v179_v26, 96  ;;  %s453_s5 = smov [#allocation5]  }
  0x3f   : > { %v161_v25 = vsel %vm153_vm0, %v150_v22, %v146_v21  ;;  %p383_p12 = pnand %p382_p6, %p656_p11  ;;  %s385_s11 = sshll.u32 %s453_s5, 4  ;;  %s386_s11 = int_to_ptr.vmem [resolvable:$false] %s385_s11 }
  0x40   : > { %s387_s13 = scalar_lea.vmem %s386_s11, 2048  ;;  %p388_p8 = scmp.lt.s32.totalorder %s595_s27, %s386_s11 }
  0x41   : > { %p384_p13 = pneg %p383_p12  ;;  %p389_p10 = scmp.lt.s32.totalorder %s387_s13, %s381_s4 }
  0x42   : > { %168 = vrot.lane.b32.xlu1 %v155_v14, %s452_s25  ;;  %164 = vrot.lane.b32.xlu0 %v154_v17, %s452_s25 }
  0x43   : > { %p390_p0 = por %p389_p10, %p388_p8 }
  0x45   : > { %p391_p2 = pnand %p390_p0, %p384_p13 }
  0x46   : > { %172 = vrot.lane.b32.xlu1 %v156_v20, %s452_s25  ;;  %170 = vrot.lane.b32.xlu0 %v160_v23, %s452_s25 }
  0x4a   : > { %176 = vrot.lane.b32.xlu1 %v157_v24, %s452_s25  ;;  %174 = vrot.lane.b32.xlu0 %v161_v25, %s452_s25 }
  0xb0   : > { %v167_v27 = vpop.permute.xlu1 %166  ;;  %v163_v28 = vpop.permute.xlu0 %162 }
  0xb1   : > { %v185_v29 = vsel %vm180_vm1, %v163_v28, %v167_v27 }
  0xb2   : > { %192 = vst [vmem:[%s134_s17 + $0x18] sm:$0xff] %v185_v29 }
  0xb4   : > { %v169_v30 = vpop.permute.xlu1 %168  ;;  %v165_v31 = vpop.permute.xlu0 %164 }
  0xb5   : > { %v186_v32 = vsel %vm180_vm1, %v165_v31, %v169_v30 }
  0xb6   : > { %196 = vst [vmem:[%s134_s17 + $0x38] sm:$0xff] %v186_v32 }
  0xb8   : > { %v173_v33 = vpop.permute.xlu1 %172  ;;  %v171_v35 = vpop.permute.xlu0 %170 }
  0xb9   : > { %v184_v34 = vsel %vm180_vm1, %v169_v30, %v173_v33  ;;  %v183_v36 = vsel %vm180_vm1, %v167_v27, %v171_v35 }
  0xba   : > { %193 = vst [vmem:[%s134_s17 + $0x20] sm:$0xff] %v184_v34  ;;  %189 = vst [vmem:[%s134_s17] sm:$0xff] %v183_v36 }
  0xbc   : > { %v177_v37 = vpop.permute.xlu1 %176  ;;  %v175_v40 = vpop.permute.xlu0 %174 }
  0xbd   : > { %v182_v38 = vsel %vm180_vm1, %v173_v33, %v177_v37  ;;  %v188_v39 = vsel %vm180_vm1, %v177_v37, %v165_v31  ;;  %v181_v41 = vsel %vm180_vm1, %v171_v35, %v175_v40  ;;  %v187_v42 = vsel %vm180_vm1, %v175_v40, %v163_v28 }
  0xbe   : > { %194 = vst [vmem:[%s134_s17 + $0x28] sm:$0xff] %v182_v38  ;;  %195 = vst [vmem:[%s134_s17 + $0x30] sm:$0xff] %v188_v39 }
  0xbf   : > { %190 = vst [vmem:[%s134_s17 + $0x8] sm:$0xff] %v181_v41  ;;  %191 = vst [vmem:[%s134_s17 + $0x10] sm:$0xff] %v187_v42 }
  0xc0   : > { %394 = shalt.err (!%p391_p2)
}
  0xc1   : > { %s395_s14 = scalar_lea.hbm %s600_s3, 1024  ;;  %s399_s21 = scalar_lea.hbm %s649_s1, 2048 }
  0xc2   : > { %p396_p4 = scmp.ne.s32.totalorder %s600_s3, %s395_s14  ;;  %p400_p9 = scmp.lt.u32.totalorder %s600_s3, %s649_s1 }
  0xc3   : > { %p401_p1 = scmp.lt.u32.totalorder %s399_s21, %s395_s14  ;;  %p403_p6 = scmp.lt.u32.totalorder %s395_s14, %s600_s3 }
  0xc4   : > { %p397_p5 = pnand %p396_p4, %p656_p11 }
  0xc5   : > { %p402_p3 = por %p401_p1, %p400_p9 }
  0xc6   : > { %p398_p7 = pneg %p397_p5 }
  0xc7   : > { %p404_p12 = por %p403_p6, %p402_p3 }
  0xc9   : > { %p405_p13 = pnand %p404_p12, %p398_p7 }
  0xcb   : > { %408 = shalt.err (!%p405_p13)
}
  0xcc   : > { %s454_s26 = smov 512   ;;  %s455_s30 = smov 32  }
  0xcd   : > { %302 = dma.vmem_to_hbm [thread:$0]  (%p656_p11), %s595_s27, 1024, %s600_s3, %s198_s10, %s454_s26, %s454_s26, %s455_s30  }
  0xce PF: > { %s226_s25 = sand.u32 1, %s435_s6   ;;  %p657_p8 = scmp.ne.s32.totalorder %s654_s19, 0 }
  0xcf   : > { %p658_p10 = scmp.ge.s32.totalorder %s447_s9, 2  ;;  %s227_s17 = scalar_lea.sflag [#allocation4], %s226_s25 }
  0xd1   : > { %p309_p0 = pnand %p658_p10, %p657_p8 }
  0xd3   : > { %430 = dma.done.wait (!%p309_p0), %s227_s17, 1024  }
  0xd4   : > { %432 = vsyncadd (!%p309_p0), %s227_s17, 4294966272  ;;  %p14_p2 = scmp.ge.s32.totalorder %s491_s12, 4   ;;  %s659_s6 = smov %s439_s7 }
  0xd5   : > { %s660_s7 = smov %s443_s8  ;;  %s661_s8 = smov %s503_s15 }
  0xd6   : > { %s662_s9 = smov %s491_s12  ;;  %16 = sbr.rel (!%p14_p2) target bundleno = 5 (0x5), region = 69 }
  0xdd   :  { %232 = vsyncpa [#allocation3], 1 }
  0xde   :  { %234 = vsyncpa [#allocation3 + $0x1], 1 }
  0xdf   :  { %235 = vsyncpa [#allocation4], 1 }
  0xe0   :  { %237 = vsyncpa [#allocation4 + $0x1], 1 }

</bundles_post_ra>
